<compile_context>
chip_gen: v5e
topology: v5e:2x2
jax: 0.10.0
libtpu: 0.0.40
codegen_flags: <defaults>
</compile_context>

<pallas_src>
import functools

import numpy as np
import jax
import jax.numpy as jnp
from jax.experimental import pallas as pl
from jax.experimental.pallas import tpu as pltpu


# ----------------------------- module helpers ------------------------------
def make_divisible(c, divisor):
    return (c + divisor - 1) // divisor


def calculate_zeros_width(in_features, group_size=128, pack_num=8):
    if group_size >= 128:
        size_multiplier = 1
    elif group_size == 64:
        size_multiplier = 2
    elif group_size == 32:
        size_multiplier = 4
    else:
        raise NotImplementedError
    base_width = make_divisible(in_features // group_size, pack_num)
    base_width = make_divisible(base_width, size_multiplier) * size_multiplier
    return base_width


def _pack_permutation(N, K, interleave=4, kstride=64):
    """Flat-index permutation implementing pack_intweight's reshape/transpose chain."""
    P = np.arange(N * K, dtype=np.int64).reshape(N, K)
    P = P.reshape(N, K // 32, 32)
    P = P.reshape(N, K // 32, 4, 4, 2).transpose(0, 1, 3, 2, 4)
    P = P.reshape(N, K // 32, 32)
    P = P.reshape(N, K // 32, 4, 8)
    P = P.reshape(N, K // 32, 4, 4, 2).transpose(0, 1, 2, 4, 3)
    P = P.reshape(N, K)
    P = P.reshape(N // interleave, interleave, K // kstride, kstride)
    P = P.transpose(0, 2, 1, 3)
    P = P.reshape(N // interleave, K // kstride, kstride, interleave)
    return P


def pack_intweight_np(unpacked, interleave=4, kstride=64):
    """numpy equivalent of pack_intweight (produces the int16 qweight buffer)."""
    N, K = unpacked.shape
    perm = _pack_permutation(N, K, interleave, kstride)
    PK = unpacked.reshape(-1)[perm.reshape(-1)].reshape(perm.shape).astype(np.int32)
    packed = PK[..., 0] | (PK[..., 1] << 4) | (PK[..., 2] << 8) | (PK[..., 3] << 12)
    return packed.reshape(N // interleave, K).astype(np.int16)


def unpack_qweight_np(qweight, N, K, interleave=4, kstride=64):
    """Invert the AWQ int16 interleaved packing back to (N, K) int values 0..15."""
    perm = _pack_permutation(N, K, interleave, kstride)
    q = qweight.astype(np.int32) & 0xFFFF
    q = q.reshape(N // interleave, K // kstride, kstride)
    nibs = np.stack([(q >> (4 * i)) & 0xF for i in range(4)], axis=-1)
    out = np.zeros(N * K, dtype=np.int32)
    out[perm.reshape(-1)] = nibs.reshape(-1)
    return out.reshape(N, K)


# ------------------------------ Pallas kernel -------------------------------
def _awq_gemm_kernel(x_ref, xs_ref, wq_ref, scl_ref, zer_ref, b_ref, o_ref,
                     acc_ref, qs_ref, *, group_size, gps):
    # grid = (M/tm, N/tn, kt); axis 2 is the K reduction, each step covers
    # `gps` quantization groups (tk = gps * group_size K elements).
    g = pl.program_id(2)

    @pl.when(g == 0)
    def _():
        acc_ref[...] = jnp.zeros_like(acc_ref)

    gs2 = group_size // 2

    # Stage this K-step's weights into the pre-scaled bf16 scratch:
    #   qs[k, n] = intweight[k, n] * scale[group(k), n]     (zero handled below)
    # gps is capped at 16 by construction (tk <= 2048, group_size >= 128) and
    # every group's loads/stores are self-contained, so a static unroll keeps
    # all slice starts static/aligned without inflating live ranges.
    # TODO(synk): cheaper sub-32-bit nibble unpack (u8 mask/shift or bitcast)
    # once confirmed on all target Mosaic versions; the i32 path is known-good.
    for gg in range(gps):
        p = wq_ref[gg * gs2:(gg + 1) * gs2, :].astype(jnp.int32)   # (gs2, tn)
        s = scl_ref[gg:gg + 1, :].astype(jnp.bfloat16)             # (1, tn)
        # low nibble = first half of the group's K rows, high nibble = second
        # half (packed that way host-side); p >> 4 needs no mask (p < 256).
        q_lo = (p & 0xF).astype(jnp.bfloat16)
        q_hi = (p >> 4).astype(jnp.bfloat16)
        k0 = gg * group_size
        qs_ref[k0:k0 + gs2, :] = q_lo * s
        qs_ref[k0 + gs2:k0 + group_size, :] = q_hi * s

    # One deep bf16 MXU matmul over the whole K step ...
    acc = jnp.dot(x_ref[...], qs_ref[...], preferred_element_type=jnp.float32)
    # ... plus a tiny matmul folding in the per-group zero points:
    #   x @ (q*s + z) == x @ (q*s) + rowsum_per_group(x) @ z
    acc += jnp.dot(xs_ref[...], zer_ref[...], preferred_element_type=jnp.float32)
    acc_ref[...] += acc

    @pl.when(g == pl.num_programs(2) - 1)
    def _():
        o_ref[...] = (acc_ref[...] + b_ref[...]).astype(o_ref.dtype)


# ---------------------------- jit-traced forward ----------------------------
def _wq_linear_forward(x, wq, scl, zer, b, *, in_features, out_features,
                       out_padded, group_size, gps, kt, tn):
    """y = x @ dequant(W).T + bias.  Only device-side jnp ops + the kernel."""
    orig_dtype = x.dtype
    lead = x.shape[:-1]
    K, N, Np = in_features, out_features, out_padded
    M = 1
    for d in lead:
        M *= int(d)

    # Activations in bf16 (MXU-native).
    x2 = x.reshape(M, K).astype(jnp.bfloat16)

    tm = min(256, make_divisible(M, 16) * 16)        # 16 = bf16 sublane packing
    M_pad = make_divisible(M, tm) * tm
    if M_pad != M:
        x2 = jnp.pad(x2, ((0, M_pad - M), (0, 0)))

    # Per-group activation row-sums, pre-blocked per K step: (kt, M, gps) f32.
    # Computed once here instead of once per (N tile x group) inside the kernel.
    xsums = jnp.transpose(
        x2.astype(jnp.float32).reshape(M_pad, kt, gps, group_size).sum(axis=-1),
        (1, 0, 2))

    tk = gps * group_size
    gs2 = group_size // 2
    # bf16 output halves HBM writeback vs f32; the bf16->f16 cast happens
    # outside.  TODO(synk): emit f16 stores in-kernel once Mosaic f16 store
    # support is confirmed on all target generations.
    out_dtype = jnp.bfloat16 if orig_dtype == jnp.float16 else orig_dtype

    kernel = functools.partial(_awq_gemm_kernel, group_size=group_size, gps=gps)

    # TODO(synk): for decode shapes with many K steps (esp. v7x),
    # pipeline_mode=pl.Buffered(3) on the weight BlockSpec can hide DMA
    # jitter; left at the default double-buffering depth here.
    # TODO(synk): optional int8-activation MXU path for v5e/v6e (changes
    # numerics) is not implemented.
    out = pl.pallas_call(
        kernel,
        out_shape=jax.ShapeDtypeStruct((M_pad, Np), out_dtype),
        grid_spec=pltpu.PrefetchScalarGridSpec(
            num_scalar_prefetch=0,
            grid=(M_pad // tm, Np // tn, kt),
            in_specs=[
                pl.BlockSpec((tm, tk), lambda i, j, g: (i, g)),            # x (bf16)
                pl.BlockSpec((None, tm, gps), lambda i, j, g: (g, i, 0)),  # group row-sums
                pl.BlockSpec((None, gps * gs2, tn),
                             lambda i, j, g: (j, g, 0)),                   # packed int4 (contiguous)
                pl.BlockSpec((None, gps, tn), lambda i, j, g: (g, 0, j)),  # per-group scales
                pl.BlockSpec((None, gps, tn), lambda i, j, g: (g, 0, j)),  # per-group zeros
                pl.BlockSpec((1, tn), lambda i, j, g: (0, j)),             # bias
            ],
            out_specs=pl.BlockSpec((tm, tn), lambda i, j, g: (i, j)),
            scratch_shapes=[
                pltpu.VMEM((tm, tn), jnp.float32),       # f32 accumulator
                pltpu.VMEM((tk, tn), jnp.bfloat16),      # pre-scaled weight tile
            ],
        ),
        compiler_params=pltpu.CompilerParams(
            dimension_semantics=("parallel", "parallel", "arbitrary")),
    )(x2, xsums, wq, scl, zer, b)

    return out[:M, :N].reshape(*lead, N).astype(orig_dtype)


# ----------------------------- user-facing layer -----------------------------
class WQLinearTPU:
    """Pallas/TPU replacement for WQLinear.forward.

    All numpy weight repacking happens ONCE here (outside the traced forward
    path): the AWQ int16 interleave is undone, weights are re-packed as two
    4-bit nibbles per byte, padded to a lane multiple of N, and pre-tiled in
    HBM as (N/tn, K/2, tn) so each weight block DMA is a single contiguous
    burst.  __call__ is a jit of pure device-side ops + the Pallas kernel.
    """

    def __init__(self, qweight, scales, scaled_zeros, bias,
                 in_features, out_features, group_size):
        K, N = in_features, out_features
        if group_size == -1:
            group_size = K
        assert K % group_size == 0
        # TODO(synk): group_size 32/64 (lane-unaligned K tiles) not supported.
        assert group_size % 128 == 0 or group_size == K
        assert group_size % 2 == 0
        G = K // group_size
        gs2 = group_size // 2

        # ---- static tiling decisions ----
        Np = make_divisible(N, 128) * 128            # lane-dense output tiles
        if Np <= 1024:
            tn = Np                                  # single big N tile (v5e/v6e)
        else:
            tn = 128
            for cand in (1024, 512, 256):
                if Np % cand == 0:
                    tn = cand
                    break
        # ~2048 K elements per grid step (fills the 256-deep MXU, amortizes
        # per-step overhead); largest divisor of G not exceeding the target.
        gps_target = max(1, min(G, 2048 // group_size))
        gps = 1
        for d in range(1, gps_target + 1):
            if G % d == 0:
                gps = d
        kt = G // gps

        # ---- one-time weight repack (numpy; NOT in the forward path) ----
        w_nk = unpack_qweight_np(np.asarray(qweight), N, K)       # (N, K) 0..15
        if Np != N:
            w_nk = np.pad(w_nk, ((0, Np - N), (0, 0)))
        w_gk = w_nk.T.reshape(G, group_size, Np)                  # (G, gs, Np)
        packed = (w_gk[:, :gs2, :] | (w_gk[:, gs2:, :] << 4)).astype(np.uint8)
        packed = packed.reshape(K // 2, Np)
        self.wq = jnp.asarray(np.ascontiguousarray(
            packed.reshape(K // 2, Np // tn, tn).transpose(1, 0, 2)))  # (Np/tn, K/2, tn)

        s_pad = np.zeros((G, Np), np.float32)
        z_pad = np.zeros((G, Np), np.float32)
        s_pad[:, :N] = np.asarray(scales, np.float32)[:G]
        z_pad[:, :N] = np.asarray(scaled_zeros, np.float32)[:G]
        self.scl = jnp.asarray(s_pad.reshape(kt, gps, Np))        # (kt, gps, Np)
        self.zer = jnp.asarray(z_pad.reshape(kt, gps, Np))        # (kt, gps, Np)

        bbuf = np.zeros((1, Np), np.float32)
        if bias is not None:
            bbuf[0, :N] = np.asarray(bias, np.float32).reshape(N)
        self.bias = jnp.asarray(bbuf)

        self._fwd = jax.jit(functools.partial(
            _wq_linear_forward,
            in_features=K, out_features=N, out_padded=Np,
            group_size=group_size, gps=gps, kt=kt, tn=tn))

    def __call__(self, x):
        return self._fwd(x, self.wq, self.scl, self.zer, self.bias)


# ---------------------------------- main -------------------------------------
def _run_case(key, batch, seq, in_features, out_features, group_size, atol):
    pack_num = 8                                    # 32 // w_bit (w_bit == 4)
    G = in_features // group_size
    G_pad = calculate_zeros_width(in_features, group_size) * pack_num

    k1, k2, k3, k4, k5 = jax.random.split(key, 5)

    # activations (fp16, the PyTorch module's default dtype)
    x = jax.random.normal(k1, (batch, seq, in_features)).astype(jnp.float16)

    # deterministic synthetic quantized parameters (what from_linear would build)
    intweight = np.asarray(
        jax.random.randint(k2, (out_features, in_features), 0, 16), np.int32)
    qweight = jnp.asarray(pack_intweight_np(intweight, interleave=4, kstride=64))

    scales_np = np.zeros((G_pad, out_features), np.float32)
    szeros_np = np.zeros((G_pad, out_features), np.float32)
    sc = np.asarray(jax.random.uniform(k3, (G, out_features),
                                       minval=0.01, maxval=0.05), np.float32)
    zr = np.asarray(jax.random.randint(k4, (G, out_features), 0, 16), np.float32)
    scales_np[:G] = sc
    szeros_np[:G] = -(sc * zr)                      # from_linear: -(scales * zeros)
    scales = jnp.asarray(scales_np, jnp.float16)
    scaled_zeros = jnp.asarray(szeros_np, jnp.float16)
    bias = jax.random.normal(k5, (out_features,)).astype(jnp.float16)

    # sanity: the int16 buffer round-trips through the unpacker
    assert np.array_equal(
        unpack_qweight_np(np.asarray(qweight), out_features, in_features),
        intweight)

    layer = WQLinearTPU(qweight, scales, scaled_zeros, bias,
                        in_features, out_features, group_size)
    out = jax.block_until_ready(layer(x))

    # reference in plain numpy/f32, using the f16-stored scale/zero buffers
    sc16 = np.asarray(scales, np.float32)[:G]
    zr16 = np.asarray(scaled_zeros, np.float32)[:G]
    scale_full = np.repeat(sc16, group_size, axis=0).T   # (N, K)
    zero_full = np.repeat(zr16, group_size, axis=0).T    # (N, K)
    w_deq = intweight.astype(np.float32) * scale_full + zero_full
    ref = (np.asarray(x, np.float32).reshape(-1, in_features) @ w_deq.T
           + np.asarray(bias, np.float32)).reshape(batch, seq, out_features)

    assert out.shape == (batch, seq, out_features)
    assert out.dtype == jnp.float16
    # tolerances cover bf16 activation/weight-scale rounding on top of f32 accumulation
    np.testing.assert_allclose(np.asarray(out, np.float32), ref,
                               rtol=2e-2, atol=atol)


if __name__ == "__main__":
    key = jax.random.PRNGKey(0)
    k_a, k_b = jax.random.split(key)
    # Case A: small gemm-style shape (single K step, single N tile).
    _run_case(k_a, batch=2, seq=8, in_features=256, out_features=128,
              group_size=128, atol=5e-2)
    # Case B: decode-style shape with deep K (kt=2, gps=16), exercising the
    # multi-step accumulator and the 16-group staging unroll.
    _run_case(k_b, batch=1, seq=4, in_features=4096, out_features=256,
              group_size=128, atol=2.5e-1)
    print("KERNEL_OK")
</pallas_src>

<mosaic_0001>
module attributes {stable_mosaic.version = 11 : i64} {
  func.func @_awq_gemm_kernel(%arg0: i32, %arg1: i32, %arg2: i32, %arg3: memref<16x256xbf16, #tpu.memory_space<vmem>>, %arg4: memref<1x16x2xf32, #tpu.memory_space<vmem>>, %arg5: memref<1x128x128xi8, #tpu.memory_space<vmem>>, %arg6: memref<1x2x128xf32, #tpu.memory_space<vmem>>, %arg7: memref<1x2x128xf32, #tpu.memory_space<vmem>>, %arg8: memref<1x128xf32, #tpu.memory_space<vmem>>, %arg9: memref<16x128xbf16, #tpu.memory_space<vmem>>, %arg10: memref<16x128xf32, #tpu.memory_space<vmem>>, %arg11: memref<256x128xbf16, #tpu.memory_space<vmem>>) attributes {dimension_semantics = [#tpu.dimension_semantics<parallel>, #tpu.dimension_semantics<parallel>, #tpu.dimension_semantics<arbitrary>], iteration_bounds = array<i64: 1, 1, 1>, scalar_prefetch = 0 : i64, scratch_operands = 2 : i64, tpu.core_type = #tpu.core_type<tc>, window_params = [{transform_indices = @transform_0, window_bounds = array<i64: 16, 256>}, {transform_indices = @transform_1, window_bounds = array<i64: 1, 16, 2>}, {transform_indices = @transform_2, window_bounds = array<i64: 1, 128, 128>}, {transform_indices = @transform_3, window_bounds = array<i64: 1, 2, 128>}, {transform_indices = @transform_4, window_bounds = array<i64: 1, 2, 128>}, {transform_indices = @transform_5, window_bounds = array<i64: 1, 128>}, {transform_indices = @transform_6, window_bounds = array<i64: 16, 128>}]} {
    %c0_i32 = arith.constant 0 : i32
    %0 = arith.cmpi eq, %arg2, %c0_i32 : i32
    %1 = arith.extui %0 : i1 to i32
    %c0_i32_0 = arith.constant 0 : i32
    %2 = arith.cmpi ne, %1, %c0_i32_0 : i32
    scf.if %2 {
      %cst_35 = arith.constant 0.000000e+00 : f32
      %54 = vector.broadcast %cst_35 : f32 to vector<16x128xf32>
      %c0_36 = arith.constant 0 : index
      %c0_37 = arith.constant 0 : index
      %55 = vector.load %arg10[%c0_36, %c0_37] : memref<16x128xf32, #tpu.memory_space<vmem>>, vector<16x128xf32>
      tpu.vector_store %arg10[%c0_36, %c0_37], %54 {strides = array<i32>} : memref<16x128xf32, #tpu.memory_space<vmem>>, vector<16x128xf32>,
    } else {
    }
    %c0 = arith.constant 0 : index
    %c0_1 = arith.constant 0 : index
    %c0_2 = arith.constant 0 : index
    %3 = vector.load %arg5[%c0, %c0_1, %c0_2] : memref<1x128x128xi8, #tpu.memory_space<vmem>>, vector<1x64x128xi8>
    %4 = vector.shape_cast %3 : vector<1x64x128xi8> to vector<64x128xi8>
    %5 = arith.extui %4 : vector<64x128xi8> to vector<64x128xi32>
    %c0_3 = arith.constant 0 : index
    %c0_4 = arith.constant 0 : index
    %c0_5 = arith.constant 0 : index
    %6 = vector.load %arg6[%c0_3, %c0_4, %c0_5] : memref<1x2x128xf32, #tpu.memory_space<vmem>>, vector<1x1x128xf32>
    %7 = vector.shape_cast %6 : vector<1x1x128xf32> to vector<1x128xf32>
    %8 = arith.truncf %7 : vector<1x128xf32> to vector<1x128xbf16>
    %c15_i32 = arith.constant 15 : i32
    %9 = vector.broadcast %c15_i32 : i32 to vector<64x128xi32>
    %10 = arith.andi %5, %9 : vector<64x128xi32>
    %11 = arith.sitofp %10 : vector<64x128xi32> to vector<64x128xbf16>
    %c4_i32 = arith.constant 4 : i32
    %12 = vector.broadcast %c4_i32 : i32 to vector<64x128xi32>
    %13 = arith.shrsi %5, %12 : vector<64x128xi32>
    %14 = arith.sitofp %13 : vector<64x128xi32> to vector<64x128xbf16>
    %15 = vector.broadcast %8 : vector<1x128xbf16> to vector<64x128xbf16>
    %16 = arith.mulf %11, %15 : vector<64x128xbf16>
    %c0_6 = arith.constant 0 : index
    %c0_7 = arith.constant 0 : index
    %17 = vector.load %arg11[%c0_6, %c0_7] : memref<256x128xbf16, #tpu.memory_space<vmem>>, vector<64x128xbf16>
    tpu.vector_store %arg11[%c0_6, %c0_7], %16 {strides = array<i32>} : memref<256x128xbf16, #tpu.memory_space<vmem>>, vector<64x128xbf16>,
    %18 = vector.broadcast %8 : vector<1x128xbf16> to vector<64x128xbf16>
    %19 = arith.mulf %14, %18 : vector<64x128xbf16>
    %c64 = arith.constant 64 : index
    %c0_8 = arith.constant 0 : index
    %20 = vector.load %arg11[%c64, %c0_8] : memref<256x128xbf16, #tpu.memory_space<vmem>>, vector<64x128xbf16>
    tpu.vector_store %arg11[%c64, %c0_8], %19 {strides = array<i32>} : memref<256x128xbf16, #tpu.memory_space<vmem>>, vector<64x128xbf16>,
    %c0_9 = arith.constant 0 : index
    %c64_10 = arith.constant 64 : index
    %c0_11 = arith.constant 0 : index
    %21 = vector.load %arg5[%c0_9, %c64_10, %c0_11] : memref<1x128x128xi8, #tpu.memory_space<vmem>>, vector<1x64x128xi8>
    %22 = vector.shape_cast %21 : vector<1x64x128xi8> to vector<64x128xi8>
    %23 = arith.extui %22 : vector<64x128xi8> to vector<64x128xi32>
    %c0_12 = arith.constant 0 : index
    %c1 = arith.constant 1 : index
    %c0_13 = arith.constant 0 : index
    %24 = vector.load %arg6[%c0_12, %c1, %c0_13] : memref<1x2x128xf32, #tpu.memory_space<vmem>>, vector<1x1x128xf32>
    %25 = vector.shape_cast %24 : vector<1x1x128xf32> to vector<1x128xf32>
    %26 = arith.truncf %25 : vector<1x128xf32> to vector<1x128xbf16>
    %c15_i32_14 = arith.constant 15 : i32
    %27 = vector.broadcast %c15_i32_14 : i32 to vector<64x128xi32>
    %28 = arith.andi %23, %27 : vector<64x128xi32>
    %29 = arith.sitofp %28 : vector<64x128xi32> to vector<64x128xbf16>
    %c4_i32_15 = arith.constant 4 : i32
    %30 = vector.broadcast %c4_i32_15 : i32 to vector<64x128xi32>
    %31 = arith.shrsi %23, %30 : vector<64x128xi32>
    %32 = arith.sitofp %31 : vector<64x128xi32> to vector<64x128xbf16>
    %33 = vector.broadcast %26 : vector<1x128xbf16> to vector<64x128xbf16>
    %34 = arith.mulf %29, %33 : vector<64x128xbf16>
    %c128 = arith.constant 128 : index
    %c0_16 = arith.constant 0 : index
    %35 = vector.load %arg11[%c128, %c0_16] : memref<256x128xbf16, #tpu.memory_space<vmem>>, vector<64x128xbf16>
    tpu.vector_store %arg11[%c128, %c0_16], %34 {strides = array<i32>} : memref<256x128xbf16, #tpu.memory_space<vmem>>, vector<64x128xbf16>,
    %36 = vector.broadcast %26 : vector<1x128xbf16> to vector<64x128xbf16>
    %37 = arith.mulf %32, %36 : vector<64x128xbf16>
    %c192 = arith.constant 192 : index
    %c0_17 = arith.constant 0 : index
    %38 = vector.load %arg11[%c192, %c0_17] : memref<256x128xbf16, #tpu.memory_space<vmem>>, vector<64x128xbf16>
    tpu.vector_store %arg11[%c192, %c0_17], %37 {strides = array<i32>} : memref<256x128xbf16, #tpu.memory_space<vmem>>, vector<64x128xbf16>,
    %c0_18 = arith.constant 0 : index
    %c0_19 = arith.constant 0 : index
    %39 = vector.load %arg3[%c0_18, %c0_19] : memref<16x256xbf16, #tpu.memory_space<vmem>>, vector<16x256xbf16>
    %c0_20 = arith.constant 0 : index
    %c0_21 = arith.constant 0 : index
    %40 = vector.load %arg11[%c0_20, %c0_21] : memref<256x128xbf16, #tpu.memory_space<vmem>>, vector<256x128xbf16>
    %cst = arith.constant dense<0.000000e+00> : vector<16x128xf32>
    %41 = tpu.matmul %39, %40, %cst {dimension_numbers = #tpu.dot_dimension_numbers<[1], [0], [0], [1], [0, 0, 1, 1], [], []>} : vector<16x256xbf16>, vector<256x128xbf16>, vector<16x128xf32> -> vector<16x128xf32>
    %c0_22 = arith.constant 0 : index
    %c0_23 = arith.constant 0 : index
    %c0_24 = arith.constant 0 : index
    %42 = vector.load %arg4[%c0_22, %c0_23, %c0_24] : memref<1x16x2xf32, #tpu.memory_space<vmem>>, vector<1x16x2xf32>
    %43 = vector.shape_cast %42 : vector<1x16x2xf32> to vector<16x2xf32>
    %c0_25 = arith.constant 0 : index
    %c0_26 = arith.constant 0 : index
    %c0_27 = arith.constant 0 : index
    %44 = vector.load %arg7[%c0_25, %c0_26, %c0_27] : memref<1x2x128xf32, #tpu.memory_space<vmem>>, vector<1x2x128xf32>
    %45 = vector.shape_cast %44 : vector<1x2x128xf32> to vector<2x128xf32>
    %cst_28 = arith.constant dense<0.000000e+00> : vector<16x128xf32>
    %46 = tpu.matmul %43, %45, %cst_28 {dimension_numbers = #tpu.dot_dimension_numbers<[1], [0], [0], [1], [0, 0, 1, 1], [], []>} : vector<16x2xf32>, vector<2x128xf32>, vector<16x128xf32> -> vector<16x128xf32>
    %47 = arith.addf %41, %46 : vector<16x128xf32>
    %c0_29 = arith.constant 0 : index
    %c0_30 = arith.constant 0 : index
    %48 = vector.load %arg10[%c0_29, %c0_30] : memref<16x128xf32, #tpu.memory_space<vmem>>, vector<16x128xf32>
    %49 = arith.addf %48, %47 : vector<16x128xf32>
    %c0_31 = arith.constant 0 : index
    %c0_32 = arith.constant 0 : index
    %50 = vector.load %arg10[%c0_31, %c0_32] : memref<16x128xf32, #tpu.memory_space<vmem>>, vector<16x128xf32>
    tpu.vector_store %arg10[%c0_31, %c0_32], %49 {strides = array<i32>} : memref<16x128xf32, #tpu.memory_space<vmem>>, vector<16x128xf32>,
    %c0_i32_33 = arith.constant 0 : i32
    %51 = arith.cmpi eq, %arg2, %c0_i32_33 : i32
    %52 = arith.extui %51 : i1 to i32
    %c0_i32_34 = arith.constant 0 : i32
    %53 = arith.cmpi ne, %52, %c0_i32_34 : i32
    scf.if %53 {
      %c0_35 = arith.constant 0 : index
      %c0_36 = arith.constant 0 : index
      %54 = vector.load %arg10[%c0_35, %c0_36] : memref<16x128xf32, #tpu.memory_space<vmem>>, vector<16x128xf32>
      %c0_37 = arith.constant 0 : index
      %c0_38 = arith.constant 0 : index
      %55 = vector.load %arg8[%c0_37, %c0_38] : memref<1x128xf32, #tpu.memory_space<vmem>>, vector<1x128xf32>
      %56 = vector.broadcast %55 : vector<1x128xf32> to vector<16x128xf32>
      %57 = arith.addf %54, %56 : vector<16x128xf32>
      %58 = arith.truncf %57 : vector<16x128xf32> to vector<16x128xbf16>
      %c0_39 = arith.constant 0 : index
      %c0_40 = arith.constant 0 : index
      %59 = vector.load %arg9[%c0_39, %c0_40] : memref<16x128xbf16, #tpu.memory_space<vmem>>, vector<16x128xbf16>
      tpu.vector_store %arg9[%c0_39, %c0_40], %58 {strides = array<i32>} : memref<16x128xbf16, #tpu.memory_space<vmem>>, vector<16x128xbf16>,
    } else {
    }
    return
  }
  func.func @transform_0(%arg0: i32, %arg1: i32, %arg2: i32) -> (i32, i32) {
    %c0_i32 = arith.constant 0 : i32
    return %arg0, %arg2 : i32, i32
  }
  func.func @transform_1(%arg0: i32, %arg1: i32, %arg2: i32) -> (i32, i32, i32) {
    %c0_i32 = arith.constant 0 : i32
    %c0_i32_0 = arith.constant 0 : i32
    return %arg2, %arg0, %c0_i32 : i32, i32, i32
  }
  func.func @transform_2(%arg0: i32, %arg1: i32, %arg2: i32) -> (i32, i32, i32) {
    %c0_i32 = arith.constant 0 : i32
    %c0_i32_0 = arith.constant 0 : i32
    return %arg1, %arg2, %c0_i32 : i32, i32, i32
  }
  func.func @transform_3(%arg0: i32, %arg1: i32, %arg2: i32) -> (i32, i32, i32) {
    %c0_i32 = arith.constant 0 : i32
    %c0_i32_0 = arith.constant 0 : i32
    return %arg2, %c0_i32, %arg1 : i32, i32, i32
  }
  func.func @transform_4(%arg0: i32, %arg1: i32, %arg2: i32) -> (i32, i32, i32) {
    %c0_i32 = arith.constant 0 : i32
    %c0_i32_0 = arith.constant 0 : i32
    return %arg2, %c0_i32, %arg1 : i32, i32, i32
  }
  func.func @transform_5(%arg0: i32, %arg1: i32, %arg2: i32) -> (i32, i32) {
    %c0_i32 = arith.constant 0 : i32
    %c0_i32_0 = arith.constant 0 : i32
    return %c0_i32, %arg1 : i32, i32
  }
  func.func @transform_6(%arg0: i32, %arg1: i32, %arg2: i32) -> (i32, i32) {
    %c0_i32 = arith.constant 0 : i32
    return %arg0, %arg1 : i32, i32
  }
}

</mosaic_0001>

<bundles_post_ra>
// kernel: _wq_linear_forward.1
= control target key start
LH: loop header
LB: loop body
LE: loop exit
PB: predicated region body
PF: predicated region fallthrough
CT: control target
= control target key end

     0   :  { %vm347_vm0 = vcmask 1041408   ;;  %vm340_vm1 = vcmask 15360   ;;  %s915_s2 = inlined_call_operand.vmem [shape: u8[1,128,128], index: 2, kind: input, shape index: {}]   ;;  %s916_s3 = inlined_call_operand.vmem [shape: f32[1,2,128], index: 3, kind: input, shape index: {}]   ;;  %s917_s4 = inlined_call_operand.vmem [shape: f32[1,2,128], index: 4, kind: input, shape index: {}]   ;;  %s918_s1 = inlined_call_operand.vmem [shape: f32[1,16,2], index: 1, kind: input, shape index: {}]   ;;  %s919_s0 = inlined_call_operand.vmem [shape: bf16[16,256], index: 0, kind: input, shape index: {}]   ;;  %s920_s5 = inlined_call_operand.vmem [shape: f32[1,128], index: 5, kind: input, shape index: {}]   ;;  %s921_s6 = inlined_call_operand.vmem [shape: bf16[16,128], index: 6, kind: output, shape index: {}]  }
   0x1   :  { %v30_v0 = vld [vmem:[%s915_s2 + $0x8] sm:$0xff]  ;;  %v47_v1 = vld [vmem:[%s916_s3] sm:$0x1]  ;;  %v167_v2 = vld [vmem:[%s915_s2 + $0x18] sm:$0xff] }
   0x2   :  { %v37_v3 = vunpack.c.2.s8 %v30_v0  ;;  %v38_v4 = vunpack.c.3.s8 %v30_v0  ;;  %v48_v5 = vpack.c.bf16 %v47_v1, %v47_v1  ;;  %v174_v6 = vunpack.c.2.s8 %v167_v2  ;;  %v184_v7 = vld [vmem:[%s916_s3 + $0x1] sm:$0x1]  ;;  %v810_v57 = vld [vmem:[%s915_s2 + $0x10] sm:$0xff] }
   0x3   :  { %v175_v8 = vunpack.c.3.s8 %v167_v2  ;;  %v185_v9 = vpack.c.bf16 %v184_v7, %v184_v7  ;;  %v35_v10 = vunpack.c.0.s8 %v30_v0  ;;  %v36_v11 = vunpack.c.1.s8 %v30_v0  ;;  %v29_v52 = vld [vmem:[%s915_s2] sm:$0xff] }
   0x4   :  { %v774_v12 = vand.u32 255, %v37_v3  ;;  %v776_v13 = vand.u32 255, %v38_v4  ;;  %v98_v14 = vpack.i.b16 %v48_v5, %v48_v5  ;;  %v778_v15 = vand.u32 255, %v174_v6 }
   0x5   :  { %v780_v16 = vand.u32 255, %v175_v8  ;;  %v235_v17 = vpack.i.b16 %v185_v9, %v185_v9  ;;  %v782_v18 = vand.u32 255, %v35_v10  ;;  %v784_v19 = vand.u32 255, %v36_v11 }
   0x6   :  { %v79_v20 = vshra.s32 %v774_v12, 4  ;;  %v80_v21 = vshra.s32 %v776_v13, 4  ;;  %v100_v22 = vperm.slane %v98_v14, 0  ;;  %v216_v23 = vshra.s32 %v778_v15, 4 }
   0x7   :  { %v217_v24 = vshra.s32 %v780_v16, 4  ;;  %v237_v25 = vperm.slane %v235_v17, 0  ;;  %v77_v26 = vshra.s32 %v782_v18, 4  ;;  %v78_v27 = vshra.s32 %v784_v19, 4 }
   0x8   :  { %v87_v28 = vcvt.s32.f32 %v79_v20  ;;  %v88_v29 = vcvt.s32.f32 %v80_v21  ;;  %v792_v30 = vunpack.c.l.bf16 %v100_v22  ;;  %v224_v31 = vcvt.s32.f32 %v216_v23 }
   0x9   :  { %v225_v32 = vcvt.s32.f32 %v217_v24  ;;  %v794_v33 = vunpack.c.l.bf16 %v237_v25  ;;  %v85_v34 = vcvt.s32.f32 %v77_v26  ;;  %v86_v35 = vcvt.s32.f32 %v78_v27 }
   0xa   :  { %v95_v36 = vpack.c.bf16 %v87_v28, %v87_v28  ;;  %v96_v37 = vpack.c.bf16 %v88_v29, %v88_v29  ;;  %v232_v38 = vpack.c.bf16 %v224_v31, %v224_v31  ;;  %v172_v39 = vunpack.c.0.s8 %v167_v2 }
   0xb   :  { %v233_v40 = vpack.c.bf16 %v225_v32, %v225_v32  ;;  %v93_v41 = vpack.c.bf16 %v85_v34, %v85_v34  ;;  %v94_v42 = vpack.c.bf16 %v86_v35, %v86_v35  ;;  %v173_v43 = vunpack.c.1.s8 %v167_v2 }
   0xc   :  { %v140_v44 = vunpack.c.l.bf16 %v95_v36  ;;  %v141_v45 = vunpack.c.l.bf16 %v96_v37  ;;  %v277_v46 = vunpack.c.l.bf16 %v232_v38  ;;  %v796_v47 = vand.u32 255, %v172_v39 }
   0xd   :  { %v278_v48 = vunpack.c.l.bf16 %v233_v40  ;;  %v138_v49 = vunpack.c.l.bf16 %v93_v41  ;;  %v139_v50 = vunpack.c.l.bf16 %v94_v42  ;;  %v798_v51 = vand.u32 255, %v173_v43 }
   0xe   :  { %v148_v53 = vmul.f32 %v140_v44, %v792_v30  ;;  %v149_v54 = vmul.f32 %v141_v45, %v792_v30  ;;  %v285_v55 = vmul.f32 %v277_v46, %v794_v33  ;;  %v214_v56 = vshra.s32 %v796_v47, 4 }
   0xf   :  { %v286_v58 = vmul.f32 %v278_v48, %v794_v33  ;;  %v146_v59 = vmul.f32 %v138_v49, %v792_v30  ;;  %v147_v60 = vmul.f32 %v139_v50, %v792_v30  ;;  %v215_v61 = vshra.s32 %v798_v51, 4 }
  0x10   :  { %v664_v62 = vpack.c.bf16 %v149_v54, %v148_v53  ;;  %v222_v63 = vcvt.s32.f32 %v214_v56  ;;  %v33_v0 = vunpack.c.2.s8 %v29_v52  ;;  %v34_v1 = vunpack.c.3.s8 %v29_v52 }
  0x11   :  { %v704_v2 = vpack.c.bf16 %v286_v58, %v285_v55  ;;  %v659_v3 = vpack.c.bf16 %v147_v60, %v146_v59  ;;  %v223_v4 = vcvt.s32.f32 %v215_v61  ;;  %v170_v5 = vunpack.c.2.s8 %v810_v57 }
  0x12   :  { %717 = vst [vmem:[#allocation3 + $0x48] sm:$0xff] %v664_v62   ;;  %v230_v6 = vpack.c.bf16 %v222_v63, %v222_v63  ;;  %v817_v7 = vand.u32 255, %v33_v0  ;;  %v819_v8 = vand.u32 255, %v34_v1  ;;  %v171_v9 = vunpack.c.3.s8 %v810_v57 }
  0x13   :  { %725 = vst [vmem:[#allocation3 + $0x28] sm:$0xff] %v704_v2   ;;  %v231_v10 = vpack.c.bf16 %v223_v4, %v223_v4  ;;  %v822_v11 = vand.u32 255, %v170_v5  ;;  %v31_v14 = vunpack.c.0.s8 %v29_v52  ;;  %v32_v17 = vunpack.c.1.s8 %v29_v52 }
  0x14   :  { %716 = vst [vmem:[#allocation3 + $0x8] sm:$0xff] %v659_v3   ;;  %v275_v20 = vunpack.c.l.bf16 %v230_v6  ;;  %v75_v21 = vshra.s32 %v817_v7, 4  ;;  %v76_v22 = vshra.s32 %v819_v8, 4  ;;  %v826_v23 = vand.u32 255, %v171_v9 }
  0x15   :  { %v276_v24 = vunpack.c.l.bf16 %v231_v10  ;;  %v212_v25 = vshra.s32 %v822_v11, 4  ;;  %v829_v26 = vand.u32 255, %v31_v14  ;;  %v831_v27 = vand.u32 255, %v32_v17 }
  0x16   :  { %v283_v28 = vmul.f32 %v275_v20, %v794_v33  ;;  %v83_v29 = vcvt.s32.f32 %v75_v21  ;;  %v84_v31 = vcvt.s32.f32 %v76_v22  ;;  %v213_v32 = vshra.s32 %v826_v23, 4 }
  0x17   :  { %v284_v34 = vmul.f32 %v276_v24, %v794_v33  ;;  %v220_v35 = vcvt.s32.f32 %v212_v25  ;;  %v73_v36 = vshra.s32 %v829_v26, 4  ;;  %v74_v37 = vshra.s32 %v831_v27, 4 }
  0x18   :  { %v91_v38 = vpack.c.bf16 %v83_v29, %v83_v29  ;;  %v92_v39 = vpack.c.bf16 %v84_v31, %v84_v31  ;;  %v221_v40 = vcvt.s32.f32 %v213_v32  ;;  %v168_v41 = vunpack.c.0.s8 %v810_v57 }
  0x19   :  { %v617_v42 = vld [vmem:[#allocation3 + $0x48] sm:$0xff]  ;;  %v699_v43 = vpack.c.bf16 %v284_v34, %v283_v28  ;;  %v228_v44 = vpack.c.bf16 %v220_v35, %v220_v35  ;;  %v81_v45 = vcvt.s32.f32 %v73_v36  ;;  %v82_v46 = vcvt.s32.f32 %v74_v37 }
  0x1a   :  { %v625_v48 = vld [vmem:[#allocation3 + $0x28] sm:$0xff]  ;;  %v136_v49 = vunpack.c.l.bf16 %v91_v38  ;;  %v137_v50 = vunpack.c.l.bf16 %v92_v39  ;;  %v229_v52 = vpack.c.bf16 %v221_v40, %v221_v40  ;;  %v169_v53 = vunpack.c.1.s8 %v810_v57  ;;  %480 = vmatpush.bf16.msra.mxu1 %v617_v42 }
  0x1b   :  { %v616_v54 = vld [vmem:[#allocation3 + $0x8] sm:$0xff]  ;;  %724 = vst [vmem:[#allocation3 + $0x78] sm:$0xff] %v699_v43   ;;  %v273_v55 = vunpack.c.l.bf16 %v228_v44  ;;  %v89_v56 = vpack.c.bf16 %v81_v45, %v81_v45  ;;  %v90_v58 = vpack.c.bf16 %v82_v46, %v82_v46  ;;  %v840_v59 = vand.u32 255, %v168_v41  ;;  %494 = vmatpush.bf16.msra.mxu2 %v625_v48 }
  0x1c   :  { %v144_v60 = vmul.f32 %v136_v49, %v792_v30  ;;  %v145_v61 = vmul.f32 %v137_v50, %v792_v30  ;;  %v274_v62 = vunpack.c.l.bf16 %v229_v52  ;;  %v844_v63 = vand.u32 255, %v169_v53 }
  0x1d   :  { %v281_v0 = vmul.f32 %v273_v55, %v794_v33  ;;  %v134_v1 = vunpack.c.l.bf16 %v89_v56  ;;  %v135_v57 = vunpack.c.l.bf16 %v90_v58  ;;  %v210_v2 = vshra.s32 %v840_v59, 4 }
  0x1e   :  { %v654_v3 = vpack.c.bf16 %v145_v61, %v144_v60  ;;  %v282_v4 = vmul.f32 %v274_v62, %v794_v33  ;;  %v211_v5 = vshra.s32 %v844_v63, 4  ;;  %v55_v6 = vand.u32 15, %v774_v12  ;;  %481 = vmatpush.bf16.msra.mxu1 %v616_v54 }
  0x1f   :  { %v142_v9 = vmul.f32 %v134_v1, %v792_v30  ;;  %v143_v10 = vmul.f32 %v135_v57, %v792_v30  ;;  %v218_v14 = vcvt.s32.f32 %v210_v2  ;;  %v56_v17 = vand.u32 15, %v776_v13 }
  0x20   :  { %715 = vst [vmem:[#allocation3 + $0x68] sm:$0xff] %v654_v3   ;;  %v694_v20 = vpack.c.bf16 %v282_v4, %v281_v0  ;;  %v219_v21 = vcvt.s32.f32 %v211_v5  ;;  %v63_v22 = vcvt.s32.f32 %v55_v6  ;;  %v192_v24 = vand.u32 15, %v778_v15 }
  0x21   :  { %v649_v25 = vpack.c.bf16 %v143_v10, %v142_v9  ;;  %v226_v28 = vpack.c.bf16 %v218_v14, %v218_v14  ;;  %v64_v29 = vcvt.s32.f32 %v56_v17  ;;  %v193_v31 = vand.u32 15, %v780_v16 }
  0x22   :  { %v624_v12 = vld [vmem:[#allocation3 + $0x78] sm:$0xff]  ;;  %723 = vst [vmem:[#allocation3 + $0x70] sm:$0xff] %v694_v20   ;;  %v227_v32 = vpack.c.bf16 %v219_v21, %v219_v21  ;;  %v71_v34 = vpack.c.bf16 %v63_v22, %v63_v22  ;;  %v200_v35 = vcvt.s32.f32 %v192_v24  ;;  %v53_v36 = vand.u32 15, %v782_v18 }
  0x23   :  { %714 = vst [vmem:[#allocation3 + $0x50] sm:$0xff] %v649_v25   ;;  %v271_v13 = vunpack.c.l.bf16 %v226_v28  ;;  %v72_v37 = vpack.c.bf16 %v64_v29, %v64_v29  ;;  %v201_v38 = vcvt.s32.f32 %v193_v31  ;;  %v54_v39 = vand.u32 15, %v784_v19  ;;  %495 = vmatpush.bf16.msra.mxu2 %v624_v12 }
  0x24   :  { %v272_v15 = vunpack.c.l.bf16 %v227_v32  ;;  %v107_v40 = vunpack.c.l.bf16 %v71_v34  ;;  %v208_v41 = vpack.c.bf16 %v200_v35, %v200_v35  ;;  %v61_v42 = vcvt.s32.f32 %v53_v36 }
  0x25   :  { %v279_v16 = vmul.f32 %v271_v13, %v794_v33  ;;  %v108_v43 = vunpack.c.l.bf16 %v72_v37  ;;  %v209_v44 = vpack.c.bf16 %v201_v38, %v201_v38  ;;  %v62_v45 = vcvt.s32.f32 %v54_v39 }
  0x26   :  { %v280_v46 = vmul.f32 %v272_v15, %v794_v33  ;;  %v116_v18 = vmul.f32 %v792_v30, %v107_v40  ;;  %v244_v48 = vunpack.c.l.bf16 %v208_v41  ;;  %v69_v49 = vpack.c.bf16 %v61_v42, %v61_v42 }
  0x27   :  { %v615_v50 = vld [vmem:[#allocation3 + $0x68] sm:$0xff]  ;;  %v117_v52 = vmul.f32 %v792_v30, %v108_v43  ;;  %v245_v19 = vunpack.c.l.bf16 %v209_v44  ;;  %v70_v53 = vpack.c.bf16 %v62_v45, %v62_v45  ;;  %v190_v54 = vand.u32 15, %v796_v47 }
  0x28   :  { %v689_v55 = vpack.c.bf16 %v280_v46, %v279_v16  ;;  %v253_v56 = vmul.f32 %v794_v33, %v244_v48  ;;  %v105_v58 = vunpack.c.l.bf16 %v69_v49  ;;  %v191_v60 = vand.u32 15, %v798_v51  ;;  %482 = vmatpush.bf16.msra.mxu1 %v615_v50 }
  0x29   :  { %v623_v61 = vld [vmem:[#allocation3 + $0x70] sm:$0xff]  ;;  %v644_v62 = vpack.c.bf16 %v117_v52, %v116_v18  ;;  %v254_v0 = vmul.f32 %v794_v33, %v245_v19  ;;  %v106_v1 = vunpack.c.l.bf16 %v70_v53  ;;  %v198_v57 = vcvt.s32.f32 %v190_v54 }
  0x2a   :  { %v614_v2 = vld [vmem:[#allocation3 + $0x50] sm:$0xff]  ;;  %722 = vst [vmem:[#allocation3 + $0x60] sm:$0xff] %v689_v55   ;;  %v114_v3 = vmul.f32 %v792_v30, %v105_v58  ;;  %v199_v4 = vcvt.s32.f32 %v191_v60  ;;  %v51_v47 = vand.u32 15, %v817_v7  ;;  %v52_v5 = vand.u32 15, %v819_v8  ;;  %496 = vmatpush.bf16.msra.mxu2 %v623_v61 }
  0x2b   :  { %713 = vst [vmem:[#allocation3 + $0x18] sm:$0xff] %v644_v62   ;;  %v684_v6 = vpack.c.bf16 %v254_v0, %v253_v56  ;;  %v115_v51 = vmul.f32 %v792_v30, %v106_v1  ;;  %v206_v9 = vpack.c.bf16 %v198_v57, %v198_v57  ;;  %v188_v10 = vand.u32 15, %v822_v11 }
  0x2c   :  { %v207_v14 = vpack.c.bf16 %v199_v4, %v199_v4  ;;  %v59_v17 = vcvt.s32.f32 %v51_v47  ;;  %v60_v20 = vcvt.s32.f32 %v52_v5  ;;  %v189_v21 = vand.u32 15, %v826_v23  ;;  %483 = vmatpush.bf16.msra.mxu1 %v614_v2  ;;  %v538_v5 = vld [vmem:[%s919_s0] sm:$0xf] }
  0x2d   :  { %721 = vst [vmem:[#allocation3 + $0x38] sm:$0xff] %v684_v6   ;;  %v639_v22 = vpack.c.bf16 %v115_v51, %v114_v3  ;;  %v242_v24 = vunpack.c.l.bf16 %v206_v9  ;;  %v196_v7 = vcvt.s32.f32 %v188_v10  ;;  %v49_v8 = vand.u32 15, %v829_v26  ;;  %v338_v3 = vld [vmem:[%s918_s1 + $0x8] sm:$0xff]  ;;  %v608_v9 = vld [vmem:[%s919_s0 + $0x4] sm:$0xf] }
  0x2e   :  { %v243_v25 = vunpack.c.l.bf16 %v207_v14  ;;  %v67_v28 = vpack.c.bf16 %v59_v17, %v59_v17  ;;  %v68_v29 = vpack.c.bf16 %v60_v20, %v60_v20  ;;  %v197_v31 = vcvt.s32.f32 %v189_v21  ;;  %v540_v10 = vld [vmem:[%s919_s0 + $0x8] sm:$0xf0] }
  0x2f   :  { %712 = vst [vmem:[#allocation3 + $0x58] sm:$0xff] %v639_v22   ;;  %v251_v12 = vmul.f32 %v794_v33, %v242_v24  ;;  %v204_v11 = vpack.c.bf16 %v196_v7, %v196_v7  ;;  %v50_v32 = vand.u32 15, %v831_v27  ;;  %v57_v34 = vcvt.s32.f32 %v49_v8  ;;  %v339_v27 = vld [vmem:[%s917_s4] sm:$0x3] }
  0x30   :  { %v252_v23 = vmul.f32 %v794_v33, %v243_v25  ;;  %v103_v35 = vunpack.c.l.bf16 %v67_v28  ;;  %v104_v36 = vunpack.c.l.bf16 %v68_v29  ;;  %v205_v13 = vpack.c.bf16 %v197_v31, %v197_v31  ;;  %533 = vmatpush.msk.msra.mxu0 %vm347_vm0, %v339_v27  ;;  %v726_v28 = vld [vmem:[%s920_s5] ss:$0 sm:$0xff] }
  0x31   :  { %v622_v37 = vld [vmem:[#allocation3 + $0x60] sm:$0xff]  ;;  %v240_v38 = vunpack.c.l.bf16 %v204_v11  ;;  %v58_v39 = vcvt.s32.f32 %v50_v32  ;;  %v65_v26 = vpack.c.bf16 %v57_v34, %v57_v34  ;;  %v186_v15 = vand.u32 15, %v840_v59 }
  0x32   :  { %v613_v40 = vld [vmem:[#allocation3 + $0x18] sm:$0xff]  ;;  %v679_v41 = vpack.c.bf16 %v252_v23, %v251_v12  ;;  %v112_v42 = vmul.f32 %v792_v30, %v103_v35  ;;  %v113_v16 = vmul.f32 %v792_v30, %v104_v36  ;;  %v241_v43 = vunpack.c.l.bf16 %v205_v13  ;;  %497 = vmatpush.bf16.msra.mxu2 %v622_v37  ;;  %v337_v59 = vld [vmem:[%s918_s1] sm:$0xff] }
  0x33   :  { %v249_v44 = vmul.f32 %v794_v33, %v240_v38  ;;  %v66_v45 = vpack.c.bf16 %v58_v39, %v58_v39  ;;  %v101_v46 = vunpack.c.l.bf16 %v65_v26  ;;  %v187_v18 = vand.u32 15, %v844_v63  ;;  %484 = vmatpush.bf16.msra.mxu1 %v613_v40  ;;  %534 = vmatmul.msk.f32.vlgmr.msra.gmra.mxu0 %vm340_vm1, %v337_v59 }
  0x34   :  { %v621_v48 = vld [vmem:[#allocation3 + $0x38] sm:$0xff]  ;;  %720 = vst [vmem:[#allocation3 + $0x10] sm:$0xff] %v679_v41   ;;  %v634_v49 = vpack.c.bf16 %v113_v16, %v112_v42  ;;  %v250_v50 = vmul.f32 %v794_v33, %v241_v43  ;;  %v194_v52 = vcvt.s32.f32 %v186_v15  ;;  %v543_v17 = vor.u32 %v608_v9, %v540_v10 }
  0x35   :  { %v102_v19 = vunpack.c.l.bf16 %v66_v45  ;;  %v110_v53 = vmul.f32 %v792_v30, %v101_v46  ;;  %v195_v54 = vcvt.s32.f32 %v187_v18 }
  0x36   :  { %v612_v55 = vld [vmem:[#allocation3 + $0x58] sm:$0xff]  ;;  %711 = vst [vmem:[#allocation3] sm:$0xff] %v634_v49   ;;  %v674_v63 = vpack.c.bf16 %v250_v50, %v249_v44  ;;  %v202_v56 = vpack.c.bf16 %v194_v52, %v194_v52  ;;  %498 = vmatpush.bf16.msra.mxu2 %v621_v48 }
  0x37   :  { %v111_v58 = vmul.f32 %v792_v30, %v102_v19  ;;  %v203_v60 = vpack.c.bf16 %v195_v54, %v195_v54  ;;  %485 = vmatpush.bf16.msra.mxu1 %v612_v55 }
  0x38   :  { %719 = vst [vmem:[#allocation3 + $0x20] sm:$0xff] %v674_v63   ;;  %v238_v61 = vunpack.c.l.bf16 %v202_v56 }
  0x39   :  { %v629_v62 = vpack.c.bf16 %v111_v58, %v110_v53  ;;  %v239_v0 = vunpack.c.l.bf16 %v203_v60 }
  0x3a   :  { %v247_v1 = vmul.f32 %v794_v33, %v238_v61 }
  0x3b   :  { %v620_v57 = vld [vmem:[#allocation3 + $0x10] sm:$0xff]  ;;  %630 = vst [vmem:[#allocation3 + $0x30] sm:$0xff] %v629_v62   ;;  %v248_v2 = vmul.f32 %v794_v33, %v239_v0  ;;  %535 = vmatmul.msk.f32.gmra.mxu0 %vm340_vm1, %v338_v3  ;;  %v609_v33 = vld [vmem:[%s919_s0 + $0x4] sm:$0xf0] }
  0x3c   :  { %499 = vmatpush.bf16.msra.mxu2 %v620_v57  ;;  %v539_v51 = vor.u32 %v609_v33, %v538_v5 }
  0x3d   :  { %v611_v4 = vld [vmem:[#allocation3] sm:$0xff]  ;;  %v669_v47 = vpack.c.bf16 %v248_v2, %v247_v1 }
  0x3e   :  { %486 = vmatpush.bf16.msra.mxu1 %v611_v4 }
  0x3f   :  { %v619_v30 = vld [vmem:[#allocation3 + $0x20] sm:$0xff]  ;;  %718 = vst [vmem:[#allocation3 + $0x40] sm:$0xff] %v669_v47  }
  0x40   :  { %500 = vmatpush.bf16.msra.mxu2 %v619_v30 }
  0x42   :  { %v610_v6 = vld [vmem:[#allocation3 + $0x30] sm:$0xff] }
  0x43   :  { %487 = vmatpush.bf16.msra.mxu1 %v610_v6 }
  0x46   :  { %v618_v14 = vld [vmem:[#allocation3 + $0x40] sm:$0xff]  ;;  %488 = vmatmul.bf16.vlgmr.msra.gmra.mxu1 %v539_v51 }
  0x47   :  { %501 = vmatpush.bf16.msra.mxu2 %v618_v14 }
  0x4a   :  { %502 = vmatmul.bf16.vlgmr.msra.gmra.mxu2 %v543_v17 }
  0xb0   :  { %v368_v20 = vpop.f32.mrf.mxu0 }
  0xb8   :  { %v371_v7 = vpop.f32.mrf.mxu0 }
  0xc3   :  { %v489_v21 = vpop.f32.mrf.mxu1 }
  0xc4   :  { %v490_v24 = vadd.f32 %v489_v21, %v368_v20 }
  0xcb   :  { %v491_v8 = vpop.f32.mrf.mxu1 }
  0xcc   :  { %v492_v29 = vadd.f32 %v491_v8, %v371_v7 }
  0xcd   :  { %v503_v22 = vpop.f32.mrf.mxu2 }
  0xce   :  { %v504_v25 = vadd.f32 %v503_v22, %v490_v24 }
  0xd0   :  { %v523_v11 = vadd.f32 %v726_v28, %v504_v25 }
  0xd5   :  { %v505_v31 = vpop.f32.mrf.mxu2 }
  0xd6   :  { %v506_v12 = vadd.f32 %v505_v31, %v492_v29 }
  0xd8   :  { %v524_v32 = vadd.f32 %v726_v28, %v506_v12 }
  0xda   :  { %v709_v34 = vpack.c.bf16 %v524_v32, %v523_v11 }
  0xdc   :  { %710 = vst [vmem:[%s921_s6] sm:$0xff] %v709_v34  }

</bundles_post_ra>
